<compile_context>
chip_gen: v7x
topology: tpu7x:2x2x1
jax: 0.10.0
libtpu: 0.0.40
codegen_flags: <defaults>
</compile_context>

<pallas_src>
import jax
import jax.numpy as jnp
from jax.experimental import pallas as pl
from jax.experimental.pallas import tpu as pltpu

_LANE = 128      # vreg lane width
_SUBLANE = 8     # vreg sublane count (f32)


def _round_up(x, m):
    return ((x + m - 1) // m) * m


def _relu6(v):
    return jnp.minimum(jnp.maximum(v, 0.0), 6.0)


# --------------------------------------------------------------------------- #
# Kernel
# --------------------------------------------------------------------------- #
def mlp_kernel(x_ref,
               w1_ref, b1_ref,
               w2_ref, b2_ref,
               w3_ref, b3_ref,
               w4_ref, b4_ref,
               o_ref):
    """Fused 4-layer MLP on one (TM, D_in) bf16 batch tile.

    Matmuls run bf16 x bf16 -> f32 on the MXU; bias add + relu6 stay in f32 on
    the VPU; inter-layer activations are stored bf16 (halves VMEM traffic and
    matches the rounding the next matmul would apply anyway).
    """
    def hidden(h_bf16, w_ref, b_ref):
        y = jnp.dot(h_bf16, w_ref[...], preferred_element_type=jnp.float32)
        return _relu6(y + b_ref[...]).astype(jnp.bfloat16)

    h = x_ref[...]                                       # (TM, D_in) bf16
    h = hidden(h, w1_ref, b1_ref)                        # (TM, H_pad) bf16
    h = hidden(h, w2_ref, b2_ref)
    h = hidden(h, w3_ref, b3_ref)
    y = jnp.dot(h, w4_ref[...], preferred_element_type=jnp.float32)
    y = _relu6(y + b4_ref[...])                          # (TM, D_out) f32
    o_ref[...] = y.astype(o_ref.dtype)


# --------------------------------------------------------------------------- #
# Wrapper
# --------------------------------------------------------------------------- #
@jax.jit
def mlp_forward(x, padded_params):
    """x: (N, D_in).  padded_params: 4x (W bf16 (in, out), b f32 (1, out)).

    Hidden dims of the params are pre-padded to a lane multiple; the last
    layer keeps the true D_out, so the returned array is already (N, D_out).
    """
    (w1, b1), (w2, b2), (w3, b3), (w4, b4) = padded_params
    n, d_in = x.shape
    h_pad = w1.shape[1]
    d_out = w4.shape[1]

    # Halve the input HBM stream; layer 1 consumes bf16 directly.
    x = x.astype(jnp.bfloat16)

    # Batch tile: aim for >= 2 grid steps when N allows (v7x dual-TC sharding +
    # DMA/compute overlap), capped at 512 rows.  Partial last tile is masked by
    # Pallas, so no jnp.pad / output slice is needed.
    if n <= 16:
        tm = n                                   # single full block
    else:
        tm = min(512, _round_up(pl.cdiv(n, 2), 16))
    grid = (pl.cdiv(n, tm),)

    flops = 2 * n * (d_in * h_pad + 2 * h_pad * h_pad + h_pad * d_out)
    weight_bytes = sum(w.size * w.dtype.itemsize + b.size * b.dtype.itemsize
                       for (w, b) in padded_params)
    bytes_accessed = n * d_in * 2 + weight_bytes + n * d_out * 4

    # Explicit VMEM budget: double-buffered x/out tiles + (default 2-deep)
    # resident weights + f32/bf16 intermediates, with 2x headroom.
    vmem_bytes = (2 * weight_bytes
                  + 2 * tm * d_in * 2 + 2 * tm * d_out * 4
                  + 6 * tm * h_pad * 4)
    vmem_limit = int(max(32 << 20, min(2 * vmem_bytes, 100 << 20)))

    def resident(arr):
        # Constant block index -> DMA'd once, stays VMEM-resident across the grid.
        return pl.BlockSpec(arr.shape, lambda i: (0, 0))

    out = pl.pallas_call(
        mlp_kernel,
        out_shape=jax.ShapeDtypeStruct((n, d_out), jnp.float32),
        grid=grid,
        in_specs=[
            pl.BlockSpec((tm, d_in), lambda i: (i, 0)),      # batch-tiled bf16 input
            resident(w1), resident(b1),
            resident(w2), resident(b2),
            resident(w3), resident(b3),
            resident(w4), resident(b4),
        ],
        out_specs=pl.BlockSpec((tm, d_out), lambda i: (i, 0)),
        compiler_params=pltpu.CompilerParams(
            # batch tiles are independent -> megacore / v7x dual-TC sharding
            dimension_semantics=("parallel",),
            vmem_limit_bytes=vmem_limit,
        ),
        cost_estimate=pl.CostEstimate(
            flops=flops, transcendentals=0, bytes_accessed=bytes_accessed),
    )(x, w1, b1, w2, b2, w3, b3, w4, b4)
    return out


# --------------------------------------------------------------------------- #
# Parameter construction / padding
# --------------------------------------------------------------------------- #
def init_params(key, d_in, h, d_out):
    """Torch-style init (uniform +-1/sqrt(fan_in)); W stored as (in, out), b as (out,)."""
    dims = [(d_in, h), (h, h), (h, h), (h, d_out)]
    params = []
    for (fan_in, fan_out) in dims:
        key, kw, kb = jax.random.split(key, 3)
        bound = 1.0 / jnp.sqrt(jnp.float32(fan_in))
        w = jax.random.uniform(kw, (fan_in, fan_out), jnp.float32, -bound, bound)
        b = jax.random.uniform(kb, (fan_out,), jnp.float32, -bound, bound)
        params.append((w, b))
    return params


def pad_params(params_f32, d_in, lane_multiple=_LANE):
    """Zero-pad HIDDEN feature dims to a lane multiple and cast W to bf16.

    Layer 1 keeps its input dim = d_in (x features are not padded) and the last
    layer keeps its true output dim D_out (so the kernel emits (N, D_out)
    directly and the wrapper needs no slice).  Zero padding of the hidden dims
    is exact: padded activation columns stay 0 through every relu6(h @ W + b).
    Note: on v6e/v7x with large H, `lane_multiple=256` better fills the 2x256
    MXU; 128 is kept here since the test H is tiny.
    """
    n_layers = len(params_f32)
    padded = []
    in_dim = d_in
    for idx, (w, b) in enumerate(params_f32):
        fan_in, fan_out = w.shape
        last = idx == n_layers - 1
        out_dim = fan_out if last else _round_up(fan_out, lane_multiple)
        wp = jnp.zeros((in_dim, out_dim), jnp.float32).at[:fan_in, :fan_out].set(w)
        bp = jnp.zeros((1, out_dim), jnp.float32).at[0, :fan_out].set(b)
        padded.append((wp.astype(jnp.bfloat16), bp))
        in_dim = out_dim
    return padded


# --------------------------------------------------------------------------- #
# References
# --------------------------------------------------------------------------- #
def reference_forward_f32(x, params_f32):
    """Pure-f32 forward with the exact PyTorch-module semantics."""
    h = x
    for (w, b) in params_f32:
        h = _relu6(h @ w + b[None, :])
    return h


def reference_forward_bf16(x, padded_params):
    """Mirrors the kernel's math exactly: bf16 matmul operands, f32 accumulate,
    f32 bias/relu6, bf16 inter-layer activations, f32 final output."""
    n_layers = len(padded_params)
    h = x.astype(jnp.bfloat16).astype(jnp.float32)
    for idx, (w, b) in enumerate(padded_params):
        y = jnp.dot(h, w.astype(jnp.float32), preferred_element_type=jnp.float32)
        a = _relu6(y + b)
        h = a if idx == n_layers - 1 else a.astype(jnp.bfloat16).astype(jnp.float32)
    return h


# --------------------------------------------------------------------------- #
if __name__ == "__main__":
    key = jax.random.PRNGKey(0)
    N, D_in, H, D_out = 8, 32, 32, 16

    key, kx = jax.random.split(key)
    x = jax.random.normal(kx, (N, D_in), jnp.float32)
    params = init_params(key, D_in, H, D_out)
    padded_params = pad_params(params, D_in)

    out = mlp_forward(x, padded_params)
    out = jax.block_until_ready(out)
    assert out.shape == (N, D_out)

    # Tight check against a reference that mirrors the kernel's bf16/f32 math.
    ref_tight = reference_forward_bf16(x, padded_params)
    assert jnp.allclose(out, ref_tight, atol=1e-4, rtol=1e-4), "mismatch vs bf16 reference"

    # Loose check against the exact f32 PyTorch-semantics forward
    # (only bf16 weight/activation rounding separates the two).
    ref_f32 = reference_forward_f32(x, params)
    assert jnp.allclose(out, ref_f32, atol=5e-2, rtol=5e-2), "mismatch vs f32 reference"

    print("KERNEL_OK")
</pallas_src>

<mosaic_0001>
module attributes {stable_mosaic.version = 11 : i64} {
  func.func @mlp_kernel(%arg0: i32, %arg1: memref<8x32xbf16, #tpu.memory_space<vmem>>, %arg2: memref<32x128xbf16, #tpu.memory_space<vmem>>, %arg3: memref<1x128xf32, #tpu.memory_space<vmem>>, %arg4: memref<128x128xbf16, #tpu.memory_space<vmem>>, %arg5: memref<1x128xf32, #tpu.memory_space<vmem>>, %arg6: memref<128x128xbf16, #tpu.memory_space<vmem>>, %arg7: memref<1x128xf32, #tpu.memory_space<vmem>>, %arg8: memref<128x16xbf16, #tpu.memory_space<vmem>>, %arg9: memref<1x16xf32, #tpu.memory_space<vmem>>, %arg10: memref<8x16xf32, #tpu.memory_space<vmem>>) attributes {dimension_semantics = [#tpu.dimension_semantics<parallel>], iteration_bounds = array<i64: 1>, scalar_prefetch = 0 : i64, scratch_operands = 0 : i64, tpu.core_type = #tpu.core_type<tc>, window_params = [{transform_indices = @transform_0, window_bounds = array<i64: 8, 32>}, {pipeline_mode = #tpu.pipeline_mode<synchronous>, transform_indices = @transform_1, window_bounds = array<i64: 32, 128>}, {pipeline_mode = #tpu.pipeline_mode<synchronous>, transform_indices = @transform_2, window_bounds = array<i64: 1, 128>}, {pipeline_mode = #tpu.pipeline_mode<synchronous>, transform_indices = @transform_3, window_bounds = array<i64: 128, 128>}, {pipeline_mode = #tpu.pipeline_mode<synchronous>, transform_indices = @transform_4, window_bounds = array<i64: 1, 128>}, {pipeline_mode = #tpu.pipeline_mode<synchronous>, transform_indices = @transform_5, window_bounds = array<i64: 128, 128>}, {pipeline_mode = #tpu.pipeline_mode<synchronous>, transform_indices = @transform_6, window_bounds = array<i64: 1, 128>}, {pipeline_mode = #tpu.pipeline_mode<synchronous>, transform_indices = @transform_7, window_bounds = array<i64: 128, 16>}, {pipeline_mode = #tpu.pipeline_mode<synchronous>, transform_indices = @transform_8, window_bounds = array<i64: 1, 16>}, {transform_indices = @transform_9, window_bounds = array<i64: 8, 16>}]} {
    %c0 = arith.constant 0 : index
    %c0_0 = arith.constant 0 : index
    %0 = vector.load %arg1[%c0, %c0_0] : memref<8x32xbf16, #tpu.memory_space<vmem>>, vector<8x32xbf16>
    %c0_1 = arith.constant 0 : index
    %c0_2 = arith.constant 0 : index
    %1 = vector.load %arg2[%c0_1, %c0_2] : memref<32x128xbf16, #tpu.memory_space<vmem>>, vector<32x128xbf16>
    %cst = arith.constant dense<0.000000e+00> : vector<8x128xf32>
    %2 = tpu.matmul %0, %1, %cst {dimension_numbers = #tpu.dot_dimension_numbers<[1], [0], [0], [1], [0, 0, 1, 1], [], []>} : vector<8x32xbf16>, vector<32x128xbf16>, vector<8x128xf32> -> vector<8x128xf32>
    %c0_3 = arith.constant 0 : index
    %c0_4 = arith.constant 0 : index
    %3 = vector.load %arg3[%c0_3, %c0_4] : memref<1x128xf32, #tpu.memory_space<vmem>>, vector<1x128xf32>
    %4 = vector.broadcast %3 : vector<1x128xf32> to vector<8x128xf32>
    %5 = arith.addf %2, %4 : vector<8x128xf32>
    %cst_5 = arith.constant 0.000000e+00 : f32
    %6 = vector.broadcast %cst_5 : f32 to vector<8x128xf32>
    %7 = arith.maximumf %5, %6 : vector<8x128xf32>
    %cst_6 = arith.constant 6.000000e+00 : f32
    %8 = vector.broadcast %cst_6 : f32 to vector<8x128xf32>
    %9 = arith.minimumf %7, %8 : vector<8x128xf32>
    %10 = arith.truncf %9 : vector<8x128xf32> to vector<8x128xbf16>
    %c0_7 = arith.constant 0 : index
    %c0_8 = arith.constant 0 : index
    %11 = vector.load %arg4[%c0_7, %c0_8] : memref<128x128xbf16, #tpu.memory_space<vmem>>, vector<128x128xbf16>
    %cst_9 = arith.constant dense<0.000000e+00> : vector<8x128xf32>
    %12 = tpu.matmul %10, %11, %cst_9 {dimension_numbers = #tpu.dot_dimension_numbers<[1], [0], [0], [1], [0, 0, 1, 1], [], []>} : vector<8x128xbf16>, vector<128x128xbf16>, vector<8x128xf32> -> vector<8x128xf32>
    %c0_10 = arith.constant 0 : index
    %c0_11 = arith.constant 0 : index
    %13 = vector.load %arg5[%c0_10, %c0_11] : memref<1x128xf32, #tpu.memory_space<vmem>>, vector<1x128xf32>
    %14 = vector.broadcast %13 : vector<1x128xf32> to vector<8x128xf32>
    %15 = arith.addf %12, %14 : vector<8x128xf32>
    %cst_12 = arith.constant 0.000000e+00 : f32
    %16 = vector.broadcast %cst_12 : f32 to vector<8x128xf32>
    %17 = arith.maximumf %15, %16 : vector<8x128xf32>
    %cst_13 = arith.constant 6.000000e+00 : f32
    %18 = vector.broadcast %cst_13 : f32 to vector<8x128xf32>
    %19 = arith.minimumf %17, %18 : vector<8x128xf32>
    %20 = arith.truncf %19 : vector<8x128xf32> to vector<8x128xbf16>
    %c0_14 = arith.constant 0 : index
    %c0_15 = arith.constant 0 : index
    %21 = vector.load %arg6[%c0_14, %c0_15] : memref<128x128xbf16, #tpu.memory_space<vmem>>, vector<128x128xbf16>
    %cst_16 = arith.constant dense<0.000000e+00> : vector<8x128xf32>
    %22 = tpu.matmul %20, %21, %cst_16 {dimension_numbers = #tpu.dot_dimension_numbers<[1], [0], [0], [1], [0, 0, 1, 1], [], []>} : vector<8x128xbf16>, vector<128x128xbf16>, vector<8x128xf32> -> vector<8x128xf32>
    %c0_17 = arith.constant 0 : index
    %c0_18 = arith.constant 0 : index
    %23 = vector.load %arg7[%c0_17, %c0_18] : memref<1x128xf32, #tpu.memory_space<vmem>>, vector<1x128xf32>
    %24 = vector.broadcast %23 : vector<1x128xf32> to vector<8x128xf32>
    %25 = arith.addf %22, %24 : vector<8x128xf32>
    %cst_19 = arith.constant 0.000000e+00 : f32
    %26 = vector.broadcast %cst_19 : f32 to vector<8x128xf32>
    %27 = arith.maximumf %25, %26 : vector<8x128xf32>
    %cst_20 = arith.constant 6.000000e+00 : f32
    %28 = vector.broadcast %cst_20 : f32 to vector<8x128xf32>
    %29 = arith.minimumf %27, %28 : vector<8x128xf32>
    %30 = arith.truncf %29 : vector<8x128xf32> to vector<8x128xbf16>
    %c0_21 = arith.constant 0 : index
    %c0_22 = arith.constant 0 : index
    %31 = vector.load %arg8[%c0_21, %c0_22] : memref<128x16xbf16, #tpu.memory_space<vmem>>, vector<128x16xbf16>
    %cst_23 = arith.constant dense<0.000000e+00> : vector<8x16xf32>
    %32 = tpu.matmul %30, %31, %cst_23 {dimension_numbers = #tpu.dot_dimension_numbers<[1], [0], [0], [1], [0, 0, 1, 1], [], []>} : vector<8x128xbf16>, vector<128x16xbf16>, vector<8x16xf32> -> vector<8x16xf32>
    %c0_24 = arith.constant 0 : index
    %c0_25 = arith.constant 0 : index
    %33 = vector.load %arg9[%c0_24, %c0_25] : memref<1x16xf32, #tpu.memory_space<vmem>>, vector<1x16xf32>
    %34 = vector.broadcast %33 : vector<1x16xf32> to vector<8x16xf32>
    %35 = arith.addf %32, %34 : vector<8x16xf32>
    %cst_26 = arith.constant 0.000000e+00 : f32
    %36 = vector.broadcast %cst_26 : f32 to vector<8x16xf32>
    %37 = arith.maximumf %35, %36 : vector<8x16xf32>
    %cst_27 = arith.constant 6.000000e+00 : f32
    %38 = vector.broadcast %cst_27 : f32 to vector<8x16xf32>
    %39 = arith.minimumf %37, %38 : vector<8x16xf32>
    %c0_28 = arith.constant 0 : index
    %c0_29 = arith.constant 0 : index
    %40 = vector.load %arg10[%c0_28, %c0_29] : memref<8x16xf32, #tpu.memory_space<vmem>>, vector<8x16xf32>
    tpu.vector_store %arg10[%c0_28, %c0_29], %39 {strides = array<i32>} : memref<8x16xf32, #tpu.memory_space<vmem>>, vector<8x16xf32>,
    return
  }
  func.func @transform_0(%arg0: i32) -> (i32, i32) {
    %c0_i32 = arith.constant 0 : i32
    %c0_i32_0 = arith.constant 0 : i32
    return %arg0, %c0_i32 : i32, i32
  }
  func.func @transform_1(%arg0: i32) -> (i32, i32) {
    %c0_i32 = arith.constant 0 : i32
    %c0_i32_0 = arith.constant 0 : i32
    %c0_i32_1 = arith.constant 0 : i32
    return %c0_i32, %c0_i32_0 : i32, i32
  }
  func.func @transform_2(%arg0: i32) -> (i32, i32) {
    %c0_i32 = arith.constant 0 : i32
    %c0_i32_0 = arith.constant 0 : i32
    %c0_i32_1 = arith.constant 0 : i32
    return %c0_i32, %c0_i32_0 : i32, i32
  }
  func.func @transform_3(%arg0: i32) -> (i32, i32) {
    %c0_i32 = arith.constant 0 : i32
    %c0_i32_0 = arith.constant 0 : i32
    %c0_i32_1 = arith.constant 0 : i32
    return %c0_i32, %c0_i32_0 : i32, i32
  }
  func.func @transform_4(%arg0: i32) -> (i32, i32) {
    %c0_i32 = arith.constant 0 : i32
    %c0_i32_0 = arith.constant 0 : i32
    %c0_i32_1 = arith.constant 0 : i32
    return %c0_i32, %c0_i32_0 : i32, i32
  }
  func.func @transform_5(%arg0: i32) -> (i32, i32) {
    %c0_i32 = arith.constant 0 : i32
    %c0_i32_0 = arith.constant 0 : i32
    %c0_i32_1 = arith.constant 0 : i32
    return %c0_i32, %c0_i32_0 : i32, i32
  }
  func.func @transform_6(%arg0: i32) -> (i32, i32) {
    %c0_i32 = arith.constant 0 : i32
    %c0_i32_0 = arith.constant 0 : i32
    %c0_i32_1 = arith.constant 0 : i32
    return %c0_i32, %c0_i32_0 : i32, i32
  }
  func.func @transform_7(%arg0: i32) -> (i32, i32) {
    %c0_i32 = arith.constant 0 : i32
    %c0_i32_0 = arith.constant 0 : i32
    %c0_i32_1 = arith.constant 0 : i32
    return %c0_i32, %c0_i32_0 : i32, i32
  }
  func.func @transform_8(%arg0: i32) -> (i32, i32) {
    %c0_i32 = arith.constant 0 : i32
    %c0_i32_0 = arith.constant 0 : i32
    %c0_i32_1 = arith.constant 0 : i32
    return %c0_i32, %c0_i32_0 : i32, i32
  }
  func.func @transform_9(%arg0: i32) -> (i32, i32) {
    %c0_i32 = arith.constant 0 : i32
    %c0_i32_0 = arith.constant 0 : i32
    return %arg0, %c0_i32 : i32, i32
  }
}

</mosaic_0001>

<bundles_post_ra>
// kernel: mlp_forward.1
= control target key start
LH: loop header
LB: loop body
LE: loop exit
PB: predicated region body
PF: predicated region fallthrough
CT: control target
= control target key end

     0   :  { %14 = vsyncpa [#allocation3], 0  ;;  %s869_s0 = inlined_call_operand.vmem [shape: bf16[8,32], index: 0, kind: input, shape index: {}]   ;;  %s870_s1 = inlined_call_operand.vmem [shape: bf16[32,128], index: 1, kind: input, shape index: {}]   ;;  %s871_s2 = inlined_call_operand.vmem [shape: f32[1,128], index: 2, kind: input, shape index: {}]   ;;  %s872_s3 = inlined_call_operand.vmem [shape: bf16[128,128], index: 3, kind: input, shape index: {}]   ;;  %s873_s4 = inlined_call_operand.vmem [shape: f32[1,128], index: 4, kind: input, shape index: {}]   ;;  %s874_s5 = inlined_call_operand.hbm [shape: bf16[128,128], index: 5, kind: input, shape index: {}]   ;;  %s875_s6 = inlined_call_operand.vmem [shape: f32[1,128], index: 6, kind: input, shape index: {}]   ;;  %s876_s7 = inlined_call_operand.vmem [shape: bf16[128,16], index: 7, kind: input, shape index: {}]   ;;  %s877_s8 = inlined_call_operand.vmem [shape: f32[1,16], index: 8, kind: input, shape index: {}]   ;;  %s878_s9 = inlined_call_operand.hbm [shape: f32[8,16], index: 9, kind: output, shape index: {}]  }
   0x1   :  { %15 = vsyncpa [#allocation4], 0  ;;  %s686_s30 = smov [#allocation2]   ;;  %s638_s13 = scalar_lea.hbm %s874_s5, 1024 }
   0x2   :  { %s31_s10 = sshll.u32 %s686_s30, 4  ;;  %p639_p0 = scmp.ne.s32.totalorder %s874_s5, %s638_s13  ;;  %s32_s10 = int_to_ptr.vmem [resolvable:$true] %s31_s10 }
   0x3   :  { %p642_p1 = scmp.lt.u32.totalorder %s638_s13, %s874_s5 }
   0x5   :  { %p644_p2 = pnand %p642_p1, %p639_p0 }
   0x7   :  { %647 = shalt.err (!%p644_p2)
}
   0x8   :  { %s648_s18 = scalar_lea.vmem %s32_s10, 1024  ;;  %p653_p4 = scmp.lt.s32.totalorder %s32_s10, %s32_s10 }
   0x9   :  { %p649_p3 = scmp.ne.s32.totalorder %s32_s10, %s648_s18  ;;  %p654_p5 = scmp.lt.s32.totalorder %s648_s18, %s648_s18 }
   0xb   :  { %p655_p6 = por %p654_p5, %p653_p4 }
   0xd   :  { %p656_p7 = pnand %p655_p6, %p649_p3 }
   0xf   :  { %659 = shalt.err (!%p656_p7)
}
  0x10   :  { %s687_s19 = smov 64   ;;  %s688_s20 = smov 4  }
  0x11   :  { %37 = dma.hbm_to_vmem [thread:$0]  %s874_s5, 1024, %s32_s10, [#allocation3], %s687_s19, %s687_s19, %s688_s20  }
  0x12   :  { %682 = dma.done.wait [#allocation3], 1024  }
  0x13   :  { %683 = vsyncadd [#allocation3], 4294966272  ;;  %v689_v0 = vmov 0.0   ;;  %vm690_vm0 = vmmov 0   ;;  %v612_v1 = vld [vmem:[%s870_s1] sm:$0xff]   ;;  %v613_v2 = vld [vmem:[%s870_s1 + $0x8] sm:$0xff]  }
  0x14   :  { %538 = vmatprep.subr.bf16.mxu0 %v689_v0  ;;  %542 = vmatprep.mubr.msk.bf16.mxu0 %vm690_vm0, %v689_v0  ;;  %v614_v3 = vld [vmem:[%s872_s3] sm:$0xff]   ;;  %vm72_vm1 = vcmask 261120   ;;  %v615_v4 = vld [vmem:[%s872_s3 + $0x8] sm:$0xff]   ;;  %v616_v6 = vld [vmem:[%s872_s3 + $0x10] sm:$0xff]   ;;  %vm460_vm2 = vcmask 130048  }
  0x15   :  { %546 = vmatprep.subr.bf16.mxu1 %v689_v0  ;;  %562 = vmatprep.mubr.msk.bf16.mxu1 %vm690_vm0, %v689_v0  ;;  %v48_v5 = vld [vmem:[%s869_s0] sm:$0xf]  ;;  %v617_v7 = vld [vmem:[%s872_s3 + $0x18] sm:$0xff]   ;;  %v619_v9 = vld [vmem:[%s872_s3 + $0x28] sm:$0xff]  }
  0x16   :  { %539 = vmatpush3.bf16.msra.mxu0 %v612_v1  ;;  %547 = vmatpush3.bf16.msra.mxu1 %v614_v3  ;;  %v618_v8 = vld [vmem:[%s872_s3 + $0x20] sm:$0xff]   ;;  %v620_v10 = vld [vmem:[%s872_s3 + $0x30] sm:$0xff]   ;;  %v621_v11 = vld [vmem:[%s872_s3 + $0x38] sm:$0xff]  }
  0x17   :  { %540 = vmatprep.subr.bf16.mxu0 %v689_v0  ;;  %548 = vmatprep.subr.bf16.mxu1 %v689_v0  ;;  %v622_v12 = vld [vmem:[#allocation2] sm:$0xff]   ;;  %v623_v13 = vld [vmem:[#allocation2 + $0x8] sm:$0xff]   ;;  %v624_v14 = vld [vmem:[#allocation2 + $0x10] sm:$0xff]  }
  0x18   :  { %v625_v15 = vld [vmem:[#allocation2 + $0x18] sm:$0xff]   ;;  %v626_v16 = vld [vmem:[#allocation2 + $0x20] sm:$0xff]   ;;  %v627_v17 = vld [vmem:[#allocation2 + $0x28] sm:$0xff]  }
  0x19   :  { %v477_v18 = vld [vmem:[%s871_s2] ss:$0 sm:$0xff]  ;;  %v628_v27 = vld [vmem:[#allocation2 + $0x30] sm:$0xff]   ;;  %v631_v30 = vld [vmem:[%s876_s7 + $0x8] sm:$0xff]  }
  0x1a   :  { %541 = vmatpush3.bf16.msra.mxu0 %v613_v2  ;;  %549 = vmatpush3.bf16.msra.mxu1 %v615_v4  ;;  %v629_v28 = vld [vmem:[#allocation2 + $0x38] sm:$0xff]   ;;  %v632_v31 = vld [vmem:[%s876_s7 + $0x10] sm:$0xff]   ;;  %v633_v32 = vld [vmem:[%s876_s7 + $0x18] sm:$0xff]  }
  0x1b   :  { %566 = vmatprep.subr.bf16.mxu0 %v689_v0  ;;  %550 = vmatprep.subr.bf16.mxu1 %v689_v0  ;;  %v630_v29 = vld [vmem:[%s876_s7] sm:$0xff]   ;;  %v635_v34 = vld [vmem:[%s876_s7 + $0x28] sm:$0xff]   ;;  %v636_v44 = vld [vmem:[%s876_s7 + $0x30] sm:$0xff]  }
  0x1c   :  { %v634_v33 = vld [vmem:[%s876_s7 + $0x20] sm:$0xff]   ;;  %v637_v45 = vld [vmem:[%s876_s7 + $0x38] sm:$0xff]   ;;  %s691_s7 = smov [#allocation5]  }
  0x1d   :  { %543 = vmatmul.mubr.msk.bf16.vlgmr.msra.gmra.mrb[0].mxu0 %vm72_vm1, %v48_v5  ;;  %v481_v35 = vld [vmem:[%s873_s4] ss:$0 sm:$0xff]  ;;  %s468_s18 = sshll.u32 %s691_s7, 4  ;;  %s469_s18 = int_to_ptr.vmem [resolvable:$true] %s468_s18 }
  0x1e   :  { %582 = vmatprep.mubr.msk.bf16.mxu0 %vm690_vm0, %v689_v0  ;;  %551 = vmatpush3.bf16.msra.mxu1 %v616_v6  ;;  %v490_v46 = vld [vmem:[%s875_s6] ss:$0 sm:$0xff]  ;;  %s660_s6 = scalar_lea.vmem %s469_s18, 128  ;;  %p665_p9 = scmp.lt.s32.totalorder %s469_s18, %s469_s18 }
  0x1f   :  { %552 = vmatprep.subr.bf16.mxu1 %v689_v0  ;;  %567 = vmatpush3.bf16.msra.mxu0 %v622_v12  ;;  %v499_v55 = vld [vmem:[%s877_s8] ss:$0 sm:$0xff]  ;;  %p661_p8 = scmp.ne.s32.totalorder %s469_s18, %s660_s6  ;;  %p666_p10 = scmp.lt.s32.totalorder %s660_s6, %s660_s6 }
  0x20   :  { %568 = vmatprep.subr.bf16.mxu0 %v689_v0 }
  0x21   :  { %p667_p11 = por %p666_p10, %p665_p9 }
  0x22   :  { %553 = vmatpush3.bf16.msra.mxu1 %v617_v7 }
  0x23   :  { %554 = vmatprep.subr.bf16.mxu1 %v689_v0  ;;  %569 = vmatpush3.bf16.msra.mxu0 %v623_v13  ;;  %p668_p12 = pnand %p667_p11, %p661_p8 }
  0x24   :  { %570 = vmatprep.subr.bf16.mxu0 %v689_v0 }
  0x26   :  { %555 = vmatpush3.bf16.msra.mxu1 %v618_v8 }
  0x27   :  { %556 = vmatprep.subr.bf16.mxu1 %v689_v0  ;;  %571 = vmatpush3.bf16.msra.mxu0 %v624_v14 }
  0x28   :  { %572 = vmatprep.subr.bf16.mxu0 %v689_v0 }
  0x2a   :  { %557 = vmatpush3.bf16.msra.mxu1 %v619_v9 }
  0x2b   :  { %558 = vmatprep.subr.bf16.mxu1 %v689_v0  ;;  %573 = vmatpush3.bf16.msra.mxu0 %v625_v15 }
  0x2c   :  { %574 = vmatprep.subr.bf16.mxu0 %v689_v0 }
  0x2e   :  { %559 = vmatpush3.bf16.msra.mxu1 %v620_v10 }
  0x2f   :  { %560 = vmatprep.subr.bf16.mxu1 %v689_v0  ;;  %575 = vmatpush3.bf16.msra.mxu0 %v626_v16 }
  0x30   :  { %576 = vmatprep.subr.bf16.mxu0 %v689_v0 }
  0x32   :  { %561 = vmatpush3.bf16.msra.mxu1 %v621_v11 }
  0x33   :  { %586 = vmatprep.subr.bf16.mxu1 %v689_v0  ;;  %577 = vmatpush3.bf16.msra.mxu0 %v627_v17 }
  0x34   :  { %578 = vmatprep.subr.bf16.mxu0 %v689_v0 }
  0x37   :  { %579 = vmatpush3.bf16.msra.mxu0 %v628_v27 }
  0x38   :  { %580 = vmatprep.subr.bf16.mxu0 %v689_v0 }
  0x3b   :  { %581 = vmatpush3.bf16.msra.mxu0 %v629_v28 }
  0xf0   :  { %v110_v19 = vpop.f32.mrb[0].mxu0 }
  0xf1   :  { %v111_v20 = vadd.f32 %v477_v18, %v110_v19  ;;  %v544_v21 = vpop.f32.mrb[1].mxu0 }
  0xf2   :  { %v113_v22 = vpop.f32.mrb[2].mxu0 }
  0xf3   :  { %v116_v23 = vmax.f32 %v111_v20, 0.0  ;;  %v545_v24 = vpop.f32.mrb[3].mxu0 }
  0xf5   :  { %v117_v25 = vmin.f32 %v116_v23, 6.0 }
  0xf7   :  { %v118_v26 = vpack.c.bf16 %v117_v25, %v117_v25 }
  0xf9   :  { %563 = vmatmul.mubr.bf16.vlgmr.msra.gmra.mrb[0].mxu1 %v118_v26 }
  0xfa   :  { %602 = vmatprep.mubr.msk.bf16.mxu1 %vm690_vm0, %v689_v0  ;;  %587 = vmatpush3.bf16.msra.mxu1 %v630_v29 }
  0xfb   :  { %588 = vmatprep.subr.bf16.mxu1 %v689_v0 }
  0xfe   :  { %589 = vmatpush3.bf16.msra.mxu1 %v631_v30 }
  0xff   :  { %590 = vmatprep.subr.bf16.mxu1 %v689_v0 }
 0x102   :  { %591 = vmatpush3.bf16.msra.mxu1 %v632_v31 }
 0x103   :  { %592 = vmatprep.subr.bf16.mxu1 %v689_v0 }
 0x106   :  { %593 = vmatpush3.bf16.msra.mxu1 %v633_v32 }
 0x107   :  { %594 = vmatprep.subr.bf16.mxu1 %v689_v0 }
 0x10a   :  { %595 = vmatpush3.bf16.msra.mxu1 %v634_v33 }
 0x10b   :  { %596 = vmatprep.subr.bf16.mxu1 %v689_v0 }
 0x10e   :  { %597 = vmatpush3.bf16.msra.mxu1 %v635_v34 }
 0x10f   :  { %598 = vmatprep.subr.bf16.mxu1 %v689_v0 }
 0x112   :  { %599 = vmatpush3.bf16.msra.mxu1 %v636_v44 }
 0x113   :  { %600 = vmatprep.subr.bf16.mxu1 %v689_v0 }
 0x116   :  { %601 = vmatpush3.bf16.msra.mxu1 %v637_v45 }
 0x1cc   :  { %v224_v36 = vpop.f32.mrb[0].mxu1 }
 0x1cd   :  { %v225_v37 = vadd.f32 %v481_v35, %v224_v36  ;;  %v564_v38 = vpop.f32.mrb[1].mxu1 }
 0x1ce   :  { %v227_v39 = vpop.f32.mrb[2].mxu1 }
 0x1cf   :  { %v230_v40 = vmax.f32 %v225_v37, 0.0  ;;  %v565_v41 = vpop.f32.mrb[3].mxu1 }
 0x1d1   :  { %v231_v42 = vmin.f32 %v230_v40, 6.0 }
 0x1d3   :  { %v232_v43 = vpack.c.bf16 %v231_v42, %v231_v42 }
 0x1d5   :  { %583 = vmatmul.mubr.bf16.vlgmr.msra.gmra.mrb[4].mxu0 %v232_v43 }
 0x2a8   :  { %v338_v47 = vpop.f32.mrb[4].mxu0 }
 0x2a9   :  { %v339_v48 = vadd.f32 %v490_v46, %v338_v47  ;;  %v584_v49 = vpop.f32.mrb[5].mxu0 }
 0x2aa   :  { %v341_v50 = vpop.f32.mrb[6].mxu0 }
 0x2ab   :  { %v344_v51 = vmax.f32 %v339_v48, 0.0  ;;  %v585_v52 = vpop.f32.mrb[7].mxu0 }
 0x2ad   :  { %v345_v53 = vmin.f32 %v344_v51, 6.0 }
 0x2af   :  { %v346_v54 = vpack.c.bf16 %v345_v53, %v345_v53 }
 0x2b1   :  { %603 = vmatmul.mubr.bf16.vlgmr.msra.gmra.mrb[4].mxu1 %v346_v54 }
 0x384   :  { %v452_v56 = vpop.f32.mrb[4].mxu1 }
 0x385   :  { %v453_v57 = vadd.f32 %v499_v55, %v452_v56  ;;  %v604_v58 = vpop.f32.mrb[5].mxu1 }
 0x386   :  { %v455_v59 = vpop.f32.mrb[6].mxu1 }
 0x387   :  { %v458_v60 = vmax.f32 %v453_v57, 0.0  ;;  %v605_v61 = vpop.f32.mrb[7].mxu1 }
 0x389   :  { %v459_v62 = vmin.f32 %v458_v60, 6.0 }
 0x38b   :  { %461 = vst.msk [vmem:[#allocation5] sm:$0xff] %vm460_vm2, %v459_v62 }
 0x38c   :  { %671 = shalt.err (!%p668_p12)
}
 0x38d   :  { %s672_s20 = scalar_lea.hbm %s878_s9, 128 }
 0x38e   :  { %p673_p13 = scmp.ne.s32.totalorder %s878_s9, %s672_s20  ;;  %p676_p0 = scmp.lt.u32.totalorder %s672_s20, %s878_s9 }
 0x390   :  { %p678_p1 = pnand %p676_p0, %p673_p13 }
 0x392   :  { %681 = shalt.err (!%p678_p1)
}
 0x393   :  { %471 = dma.vmem_to_hbm [thread:$0]  %s469_s18, 128, %s878_s9, [#allocation4]  }
 0x394   :  { %684 = dma.done.wait [#allocation4], 128  }
 0x395   :  { %685 = vsyncadd [#allocation4], 4294967168 }
 0x396   :  { %475 = vsyncpa [#allocation3], 1 }
 0x397   :  { %476 = vsyncpa [#allocation4], 1 }

</bundles_post_ra>
